<compile_context>
chip_gen: v7x
topology: tpu7x:2x2x1
jax: 0.10.0
libtpu: 0.0.40
codegen_flags: <defaults>
</compile_context>

<pallas_src>
import functools

import jax
import jax.numpy as jnp
from jax.experimental import pallas as pl
from jax.experimental.pallas import tpu as pltpu


def _feature_norm_kernel(x_ref, mp_ref, sp_ref, o_ref, *, eps):
    # x_ref : (C_TILE, HW)  one channel tile of one batch element (batch squeezed)
    # mp_ref: (C_TILE, 1)   precomputed avgpool(conv1(y)) per channel
    # sp_ref: (C_TILE, 1)   precomputed avgpool(conv2(y)) per channel
    x = x_ref[...].astype(jnp.float32)                       # (C_TILE, HW)
    n = x.shape[-1]

    # single-pass statistics: one read of the tile for sum and sum-of-squares
    s1 = jnp.sum(x, axis=-1, keepdims=True)                  # (C_TILE, 1)
    s2 = jnp.sum(x * x, axis=-1, keepdims=True)              # (C_TILE, 1)
    mean = s1 * (1.0 / n)
    # torch.std is unbiased (N-1); guard N==1 to avoid inf/NaN
    var = jnp.maximum(s2 - mean * s1, 0.0) / max(n - 1, 1)
    std = jnp.sqrt(var) + eps

    # fold normalization into a per-channel FMA (no per-element divide)
    scale = sp_ref[...].astype(jnp.float32) / std            # (C_TILE, 1)
    bias = mp_ref[...].astype(jnp.float32) - scale * mean    # (C_TILE, 1)
    o_ref[...] = (scale * x + bias).astype(o_ref.dtype)


def _spectral_normalize(w, n_iters=20):
    """Deterministic approximation of nn.utils.spectral_norm weight scaling."""
    # TODO(synk): PyTorch's spectral_norm keeps a persistent random u and does
    # 1 power iteration per forward; this deterministic 20-iter variant can
    # differ slightly from a live PyTorch module's sigma.
    c_out = w.shape[0]
    w_mat = w.reshape(c_out, -1).astype(jnp.float32)
    u = jnp.ones((c_out,), jnp.float32) / jnp.sqrt(c_out)
    v = None
    for _ in range(n_iters):
        v = w_mat.T @ u
        v = v / (jnp.linalg.norm(v) + 1e-12)
        u = w_mat @ v
        u = u / (jnp.linalg.norm(u) + 1e-12)
    sigma = u @ (w_mat @ v)
    return w_mat / sigma                                      # (C, 9C)


def _shift_sums(y):
    """Spatial sum of each reflection-padded 3x3 tap of y, shape (B, 9*C).

    Ordering is cin*9 + kh*3 + kw, matching a (C, C*9) weight reshaped from
    (C, C, 3, 3). The 9x shifted tensor is never materialized.
    """
    B, C, H, W = y.shape
    yp = jnp.pad(y.astype(jnp.float32), ((0, 0), (0, 0), (1, 1), (1, 1)),
                 mode="reflect")                              # (B, C, H+2, W+2)
    rows = jnp.stack([yp[:, :, kh:kh + H, :].sum(axis=2) for kh in range(3)],
                     axis=2)                                  # (B, C, 3, W+2)
    s = jnp.stack([rows[:, :, :, kw:kw + W].sum(axis=3) for kw in range(3)],
                  axis=3)                                     # (B, C, 3, 3)
    return s.reshape(B, C * 9)


def _pick_c_tile(C, HW, itemsize, budget_bytes=4 << 20):
    """Largest multiple-of-8 divisor of C whose block fits the byte budget."""
    cands = [t for t in range(8, C + 1, 8) if C % t == 0]
    if not cands:
        return C
    fitting = [t for t in cands if t * HW * itemsize <= budget_bytes]
    return max(fitting) if fitting else min(cands)


def feature_forward(x, y, w1, w2, eps=1e-6):
    B, C, H, W = x.shape
    HW = H * W
    out_dtype = x.dtype
    x_flat = x.reshape(B, C, HW)          # native dtype; upcast inside kernel

    # ---- cheap glue on tiny tensors: conv+avgpool fold, one batched matmul ----
    s = _shift_sums(y)                                        # (B, 9C)
    w1n = _spectral_normalize(w1)                             # (C, 9C)
    w2n = _spectral_normalize(w2)                             # (C, 9C)
    w_cat = jnp.concatenate([w1n, w2n], axis=0) * (1.0 / HW)  # (2C, 9C), /HW folded
    stats = jnp.dot(s, w_cat.T, preferred_element_type=jnp.float32)  # (B, 2C)
    mean_p = stats[:, :C].reshape(B, C, 1)
    std_p = stats[:, C:].reshape(B, C, 1)

    # ---- hot path: per-channel stats + per-element FMA, in Pallas ----
    itemsize = jnp.dtype(x.dtype).itemsize
    c_tile = _pick_c_tile(C, HW, itemsize)
    grid = (B, C // c_tile)

    blk_in = c_tile * HW * itemsize
    blk_out = c_tile * HW * jnp.dtype(out_dtype).itemsize
    vmem_limit = max(32 << 20, int(2 * (blk_in + blk_out) + (4 << 20)))

    kernel = functools.partial(_feature_norm_kernel, eps=eps)
    out_flat = pl.pallas_call(
        kernel,
        out_shape=jax.ShapeDtypeStruct((B, C, HW), out_dtype),
        grid_spec=pltpu.PrefetchScalarGridSpec(
            num_scalar_prefetch=0,
            grid=grid,
            in_specs=[
                pl.BlockSpec((None, c_tile, HW), lambda b, c: (b, c, 0)),
                pl.BlockSpec((None, c_tile, 1), lambda b, c: (b, c, 0)),
                pl.BlockSpec((None, c_tile, 1), lambda b, c: (b, c, 0)),
            ],
            out_specs=pl.BlockSpec((None, c_tile, HW), lambda b, c: (b, c, 0)),
        ),
        compiler_params=pltpu.CompilerParams(
            dimension_semantics=("parallel", "parallel"),
            vmem_limit_bytes=vmem_limit),
    )(x_flat, mean_p, std_p)
    return out_flat.reshape(B, C, H, W)


def feature_reference(x, y, w1, w2, eps=1e-6):
    """Pure-JAX reference mirroring the PyTorch forward."""
    B, C, H, W = x.shape
    HW = H * W
    xf = x.reshape(B, C, HW).astype(jnp.float32)
    mean_feat = jnp.mean(xf, axis=2, keepdims=True)
    std_feat = jnp.std(xf, axis=2, ddof=1, keepdims=True) + eps
    w1n = _spectral_normalize(w1).reshape(C, C, 3, 3)
    w2n = _spectral_normalize(w2).reshape(C, C, 3, 3)
    yp = jnp.pad(y.astype(jnp.float32), ((0, 0), (0, 0), (1, 1), (1, 1)),
                 mode="reflect")
    conv = lambda w: jax.lax.conv_general_dilated(
        yp, w, window_strides=(1, 1), padding="VALID",
        dimension_numbers=("NCHW", "OIHW", "NCHW"))
    mean_p = jnp.mean(conv(w1n), axis=(2, 3))[:, :, None]     # (B, C, 1)
    std_p = jnp.mean(conv(w2n), axis=(2, 3))[:, :, None]
    out = std_p * (xf - mean_feat) / std_feat + mean_p
    return out.reshape(B, C, H, W).astype(x.dtype)


if __name__ == "__main__":
    B, C, H, W = 2, 4, 16, 16
    key = jax.random.PRNGKey(0)
    kx, ky, k1, k2 = jax.random.split(key, 4)
    x = jax.random.normal(kx, (B, C, H, W), jnp.float32)
    y = jax.random.normal(ky, (B, C, H, W), jnp.float32)
    # deterministic conv weights, shape (C, C, 3, 3) -> stored flattened (C, 9C)
    fan_in = C * 3 * 3
    w1 = (jax.random.normal(k1, (C, C, 3, 3), jnp.float32)
          / jnp.sqrt(fan_in)).reshape(C, C * 9)
    w2 = (jax.random.normal(k2, (C, C, 3, 3), jnp.float32)
          / jnp.sqrt(fan_in)).reshape(C, C * 9)

    out = feature_forward(x, y, w1, w2)
    jax.block_until_ready(out)

    ref = feature_reference(x, y, w1, w2)
    assert out.shape == (B, C, H, W)
    assert jnp.allclose(out, ref, atol=1e-4, rtol=1e-4), "mismatch vs reference"
    print("KERNEL_OK")
</pallas_src>

<mosaic_0001>
module attributes {stable_mosaic.version = 11 : i64} {
  func.func @_feature_norm_kernel(%arg0: i32, %arg1: i32, %arg2: memref<1x4x256xf32, #tpu.memory_space<vmem>>, %arg3: memref<1x4x1xf32, #tpu.memory_space<vmem>>, %arg4: memref<1x4x1xf32, #tpu.memory_space<vmem>>, %arg5: memref<1x4x256xf32, #tpu.memory_space<vmem>>) attributes {dimension_semantics = [#tpu.dimension_semantics<parallel>, #tpu.dimension_semantics<parallel>], iteration_bounds = array<i64: 2, 1>, scalar_prefetch = 0 : i64, scratch_operands = 0 : i64, tpu.core_type = #tpu.core_type<tc>, window_params = [{transform_indices = @transform_0, window_bounds = array<i64: 1, 4, 256>}, {transform_indices = @transform_1, window_bounds = array<i64: 1, 4, 1>}, {transform_indices = @transform_2, window_bounds = array<i64: 1, 4, 1>}, {transform_indices = @transform_3, window_bounds = array<i64: 1, 4, 256>}]} {
    %c0 = arith.constant 0 : index
    %c0_0 = arith.constant 0 : index
    %c0_1 = arith.constant 0 : index
    %0 = vector.load %arg2[%c0, %c0_0, %c0_1] : memref<1x4x256xf32, #tpu.memory_space<vmem>>, vector<1x4x256xf32>
    %1 = vector.shape_cast %0 : vector<1x4x256xf32> to vector<4x256xf32>
    %cst = arith.constant dense<0.000000e+00> : vector<4xf32>
    %2 = vector.multi_reduction <add>, %1, %cst [1] : vector<4x256xf32> to vector<4xf32>
    %3 = vector.shape_cast %2 : vector<4xf32> to vector<4x1xf32>
    %4 = arith.mulf %1, %1 : vector<4x256xf32>
    %cst_2 = arith.constant dense<0.000000e+00> : vector<4xf32>
    %5 = vector.multi_reduction <add>, %4, %cst_2 [1] : vector<4x256xf32> to vector<4xf32>
    %6 = vector.shape_cast %5 : vector<4xf32> to vector<4x1xf32>
    %cst_3 = arith.constant 3.906250e-03 : f32
    %7 = vector.broadcast %cst_3 : f32 to vector<4x1xf32>
    %8 = arith.mulf %3, %7 : vector<4x1xf32>
    %9 = arith.mulf %8, %3 : vector<4x1xf32>
    %10 = arith.subf %6, %9 : vector<4x1xf32>
    %cst_4 = arith.constant 0.000000e+00 : f32
    %11 = vector.broadcast %cst_4 : f32 to vector<4x1xf32>
    %12 = arith.maximumf %10, %11 : vector<4x1xf32>
    %cst_5 = arith.constant 2.550000e+02 : f32
    %13 = vector.broadcast %cst_5 : f32 to vector<4x1xf32>
    %14 = arith.divf %12, %13 : vector<4x1xf32>
    %15 = math.sqrt %14 : vector<4x1xf32>
    %cst_6 = arith.constant 9.99999997E-7 : f32
    %16 = vector.broadcast %cst_6 : f32 to vector<4x1xf32>
    %17 = arith.addf %15, %16 : vector<4x1xf32>
    %c0_7 = arith.constant 0 : index
    %c0_8 = arith.constant 0 : index
    %c0_9 = arith.constant 0 : index
    %18 = vector.load %arg4[%c0_7, %c0_8, %c0_9] : memref<1x4x1xf32, #tpu.memory_space<vmem>>, vector<1x4x1xf32>
    %19 = vector.shape_cast %18 : vector<1x4x1xf32> to vector<4x1xf32>
    %20 = arith.divf %19, %17 : vector<4x1xf32>
    %c0_10 = arith.constant 0 : index
    %c0_11 = arith.constant 0 : index
    %c0_12 = arith.constant 0 : index
    %21 = vector.load %arg3[%c0_10, %c0_11, %c0_12] : memref<1x4x1xf32, #tpu.memory_space<vmem>>, vector<1x4x1xf32>
    %22 = vector.shape_cast %21 : vector<1x4x1xf32> to vector<4x1xf32>
    %23 = arith.mulf %20, %8 : vector<4x1xf32>
    %24 = arith.subf %22, %23 : vector<4x1xf32>
    %25 = vector.broadcast %20 : vector<4x1xf32> to vector<4x256xf32>
    %26 = arith.mulf %25, %1 : vector<4x256xf32>
    %27 = vector.broadcast %24 : vector<4x1xf32> to vector<4x256xf32>
    %28 = arith.addf %26, %27 : vector<4x256xf32>
    %c0_13 = arith.constant 0 : index
    %c0_14 = arith.constant 0 : index
    %c0_15 = arith.constant 0 : index
    %29 = vector.load %arg5[%c0_13, %c0_14, %c0_15] : memref<1x4x256xf32, #tpu.memory_space<vmem>>, vector<1x4x256xf32>
    %30 = vector.shape_cast %29 : vector<1x4x256xf32> to vector<4x256xf32>
    %31 = vector.shape_cast %28 : vector<4x256xf32> to vector<1x4x256xf32>
    tpu.vector_store %arg5[%c0_13, %c0_14, %c0_15], %31 {strides = array<i32>} : memref<1x4x256xf32, #tpu.memory_space<vmem>>, vector<1x4x256xf32>,
    return
  }
  func.func @transform_0(%arg0: i32, %arg1: i32) -> (i32, i32, i32) {
    %c0_i32 = arith.constant 0 : i32
    %c0_i32_0 = arith.constant 0 : i32
    return %arg0, %arg1, %c0_i32 : i32, i32, i32
  }
  func.func @transform_1(%arg0: i32, %arg1: i32) -> (i32, i32, i32) {
    %c0_i32 = arith.constant 0 : i32
    %c0_i32_0 = arith.constant 0 : i32
    return %arg0, %arg1, %c0_i32 : i32, i32, i32
  }
  func.func @transform_2(%arg0: i32, %arg1: i32) -> (i32, i32, i32) {
    %c0_i32 = arith.constant 0 : i32
    %c0_i32_0 = arith.constant 0 : i32
    return %arg0, %arg1, %c0_i32 : i32, i32, i32
  }
  func.func @transform_3(%arg0: i32, %arg1: i32) -> (i32, i32, i32) {
    %c0_i32 = arith.constant 0 : i32
    %c0_i32_0 = arith.constant 0 : i32
    return %arg0, %arg1, %c0_i32 : i32, i32, i32
  }
}

</mosaic_0001>

<bundles_post_ra>
// kernel: tpu_custom_call.1
= control target key start
LH: loop header
LB: loop body
LE: loop exit
PB: predicated region body
PF: predicated region fallthrough
CT: control target
= control target key end

     0   :  { %8 = vsyncpa [#allocation3], 0  ;;  %s741_s0 = inlined_call_operand.vmem [shape: f32[2,4,256], index: 0, kind: input, shape index: {}]   ;;  %s742_s1 = inlined_call_operand.vmem [shape: f32[2,4,1], index: 1, kind: input, shape index: {}]   ;;  %s743_s2 = inlined_call_operand.vmem [shape: f32[2,4,1], index: 2, kind: input, shape index: {}]   ;;  %s744_s3 = inlined_call_operand.hbm [shape: f32[2,4,256], index: 3, kind: output, shape index: {}]  }
   0x1   :  { %10 = vsyncpa [#allocation3 + $0x1], 0  ;;  %s619_s12 = smov 0   ;;  %s621_s13 = smov 0  }
   0x2   :  { %s623_s14 = smov 0   ;;  %s625_s15 = smov 0  }
   0x3   :  { %s627_s16 = smov 0   ;;  %s629_s17 = smov 0  }
   0x4 LB: > { %s437_s18 = sadd.s32 4294967295, %s595_s17   ;;  %s438_s19 = sadd.s32 4294967294, %s595_s17   ;;  %s595_s17 = sphi %s629_s17, %s16_s17   ;;  %s591_s16 = sphi %s627_s16, %s751_s16   ;;  %s587_s15 = sphi %s625_s15, %s750_s15   ;;  %s583_s14 = sphi %s623_s14, %s749_s14   ;;  %s579_s13 = sphi %s621_s13, %s748_s13   ;;  %s575_s12 = sphi %s619_s12, %s747_s12  }
   0x5   : > { %s28_s20 = sadd.s32 1, %s591_s16  ;;  %s121_s21 = sadd.s32 1, %s583_s14 }
   0x6   : > { %p30_p0 = scmp.ge.s32.totalorder %s28_s20, 2  ;;  %p131_p1 = scmp.ne.s32.totalorder %s583_s14, %s579_s13 }
   0x7   : > { %p132_p2 = scmp.eq.s32.totalorder %s437_s18, 1  ;;  %p137_p3 = scmp.ne.s32.totalorder %s579_s13, %s575_s12 }
   0x8   : > { %s753_s20 = smov (%p30_p0, %s28_s20), 0  ;;  %p138_p5 = scmp.eq.s32.totalorder %s438_s19, 1 }
   0x9   : > { %p659_p4 = por %p132_p2, %p131_p1  ;;  %s116_s23 = ssub.s32 %s591_s16, %s753_s20 }
   0xa   : > { %p441_p6 = scmp.ge.s32.totalorder %s595_s17, 1  ;;  %p119_p7 = scmp.eq.s32.totalorder %s116_s23, 0 }
   0xb   : > { %p666_p8 = por %p138_p5, %p137_p3  ;;  %p188_p9 = scmp.lt.s32.totalorder %s595_s17, 3 }
   0xc   : > { %s672_s25 = scalar_select %p119_p7, %s583_s14, %s121_s21  }
   0xd   : > { %p189_p10 = pnand %p441_p6, %p188_p9 }
   0xe   : > { %p230_p11 = scmp.lt.s32.totalorder (!%p189_p10), %s587_s15, 1  ;;  %vm257_vm0 = vcmask (!%p189_p10), 1043456   ;;  %v597_v10 = vmov (!%p189_p10), 0   ;;  %s227_s11 = sand.u32 (!%p189_p10), 1, %s579_s13  }
   0xf   : > { %192 = sbr.rel (%p189_p10) target bundleno = 364 (0x16c), region = 32  ;;  %510 = vset.pattern.permute.xlu1 (!%p189_p10), %v597_v10  ;;  %511 = vset.pattern.permute.xlu0 (!%p189_p10), %v597_v10  ;;  %s442_s18 = sshll.u32 (!%p189_p10), %s227_s11, 3 }
  0x10   : > { %s453_s19 = sshll.u32 (!%p189_p10), %s587_s15, 7  ;;  %s229_s21 = scalar_lea.vmem (!%p189_p10), [#allocation2], %s442_s18 }
  0x11   : > { %s328_s23 = sshll.u32 (!%p189_p10), %s229_s21, 4  ;;  %s694_s28 = scalar_lea.hbm (!%p189_p10), %s744_s3, %s453_s19  ;;  %s696_s23 = int_to_ptr.vmem [resolvable:$true] %s328_s23 }
  0x12   : > { %s312_s29 = scalar_lea.sflag (!%p189_p10), [#allocation3], %s227_s11 }
  0x16   : > { %s676_s26 = scalar_select %p230_p11, %s587_s15, 1 }
  0x17   : > { %s598_s15 = smov [#allocation2]  }
  0x18   : > { %s452_s27 = sshll.u32 %s676_s26, 3  ;;  %s445_s4 = sshll.u32 %s676_s26, 2 }
  0x19   : > { %s238_s30 = scalar_lea.vmem %s741_s0, %s452_s27  ;;  %s252_s7 = scalar_lea.vmem %s743_s2, %s445_s4 }
  0x1a   : > { %v253_v0 = vld [vmem:[%s238_s30] sm:$0xff]  ;;  %s245_s10 = scalar_lea.vmem %s742_s1, %s445_s4  ;;  %s517_s30 = scalar_lea.vmem %s696_s23, 128 }
  0x1b   : > { %v255_v1 = vcombine.high %v253_v0, %v253_v0  ;;  %v258_v2 = vsel %vm257_vm0, %v253_v0, 0.0  ;;  %v263_v3 = vmul.f32 %v253_v0, %v253_v0  ;;  %v286_v24 = vld [vmem:[%s252_s7] sm:$0xf]  ;;  %p518_p12 = scmp.ne.s32.totalorder %s696_s23, %s517_s30  ;;  %s521_s4 = sshll.u32 %s598_s15, 4  ;;  %s522_s4 = int_to_ptr.vmem [resolvable:$false] %s521_s4 }
  0x1c   : > { %v289_v27 = vld [vmem:[%s245_s10] sm:$0xf]  ;;  %s523_s5 = scalar_lea.vmem %s522_s4, 256  ;;  %p524_p1 = scmp.lt.s32.totalorder %s696_s23, %s522_s4 }
  0x1d   : > { %v259_v4 = vsel %vm257_vm0, %v255_v1, 0.0  ;;  %v265_v5 = vcombine.high %v263_v3, %v263_v3  ;;  %v267_v6 = vsel %vm257_vm0, %v263_v3, 0.0  ;;  %p519_p13 = pnand %p518_p12, %p659_p4  ;;  %p525_p2 = scmp.lt.s32.totalorder %s523_s5, %s517_s30 }
  0x1e   : > { %v260_v7 = vadd.f32 %v259_v4, %v258_v2 }
  0x1f   : > { %v268_v8 = vsel %vm257_vm0, %v265_v5, 0.0  ;;  %p520_p0 = pneg %p519_p13  ;;  %p526_p3 = por %p525_p2, %p524_p1 }
  0x20   : > { %261 = vadd.xlane.f32.xlu0 %v260_v7  ;;  %v269_v9 = vadd.f32 %v268_v8, %v267_v6 }
  0x21   : > { %p527_p5 = pnand %p526_p3, %p520_p0 }
  0x24   : > { %270 = vadd.xlane.f32.xlu0 %v269_v9 }
  0xad   : > { %v262_v11 = vpop.xlane.xlu0 %261 }
  0xae   : > { %v272_v12 = vmul.f32 0.00390625, %v262_v11 }
  0xb0   : > { %v273_v13 = vmul.f32 %v272_v12, %v262_v11 }
  0xb1   : > { %v271_v14 = vpop.xlane.xlu0 %270 }
  0xb2   : > { %v274_v15 = vsub.f32 %v271_v14, %v273_v13 }
  0xb4   : > { %v275_v16 = vmax.f32 %v274_v15, 0.0 }
  0xb6   : > { %v277_v17 = vmul.f32 0.003921569, %v275_v16 }
  0xb8   : > { %513 = vrsqrt.f32 %v277_v17  ;;  %vm280_vm1 = vcmp.eq.f32.partialorder %v277_v17, inf  ;;  %v283_v20 = vand.u32 2147483648, %v277_v17  ;;  %vm282_vm2 = vcmp.eq.f32.partialorder %v277_v17, 0.0 }
  0xc2   : > { %v514_v18 = vpop.eup %513 }
  0xc3   : > { %v279_v19 = vmul.f32 %v514_v18, %v277_v17 }
  0xc5   : > { %v281_v21 = vsel %vm280_vm1, %v277_v17, %v279_v19 }
  0xc6   : > { %v284_v22 = vsel %vm282_vm2, %v283_v20, %v281_v21 }
  0xc7   : > { %v285_v23 = vadd.f32 1e-06, %v284_v22 }
  0xc9   : > { %515 = vrcp.f32 %v285_v23 }
  0xd3   : > { %v516_v25 = vpop.eup %515 }
  0xd4   : > { %v288_v26 = vmul.f32 %v516_v25, %v286_v24 }
  0xd6   : > { %294 = vperm.xlu1 %510, %v288_v26   ;;  %v290_v28 = vmul.f32 %v288_v26, %v272_v12 }
  0xd8   : > { %v291_v29 = vsub.f32 %v289_v27, %v290_v28 }
  0xda   : > { %301 = vperm.xlu1 %510, %v291_v29  }
 0x155   : > { %v295_v30 = vpop.permute.xlu1 %294 }
 0x156   : > { %v297_v31 = vmul.f32 %v295_v30, %v253_v0  ;;  %v298_v32 = vmul.f32 %v295_v30, %v255_v1 }
 0x159   : > { %v302_v33 = vpop.permute.xlu1 %301 }
 0x15a   : > { %v304_v34 = vadd.f32 %v302_v33, %v297_v31  ;;  %v305_v35 = vadd.f32 %v302_v33, %v298_v32 }
 0x15c   : > { %v308_v36 = vcombine.low %v304_v34, %v305_v35 }
 0x15e   : > { %310 = vst [vmem:[%s229_s21] sm:$0xff] %v308_v36 }
 0x15f   : > { %530 = shalt.err (!%p527_p5)
}
 0x160   : > { %s531_s6 = scalar_lea.hbm %s694_s28, 128  ;;  %s535_s9 = scalar_lea.hbm %s744_s3, 256 }
 0x161   : > { %p532_p6 = scmp.ne.s32.totalorder %s694_s28, %s531_s6  ;;  %p536_p10 = scmp.lt.u32.totalorder %s694_s28, %s744_s3 }
 0x162   : > { %p537_p11 = scmp.lt.u32.totalorder %s535_s9, %s531_s6  ;;  %p539_p13 = scmp.lt.u32.totalorder %s531_s6, %s694_s28 }
 0x163   : > { %p533_p7 = pnand %p532_p6, %p659_p4 }
 0x164   : > { %p538_p12 = por %p537_p11, %p536_p10 }
 0x165   : > { %p534_p9 = pneg %p533_p7 }
 0x166   : > { %p540_p0 = por %p539_p13, %p538_p12 }
 0x168   : > { %p541_p1 = pnand %p540_p0, %p534_p9 }
 0x16a   : > { %544 = shalt.err (!%p541_p1)
}
 0x16b   : > { %454 = dma.vmem_to_hbm [thread:$0]  (%p659_p4), %s696_s23, 128, %s694_s28, %s312_s29  }
 0x16c PF: > { %p460_p2 = scmp.ge.s32.totalorder %s595_s17, 2  ;;  %s340_s18 = sand.u32 1, %s575_s12  }
 0x16d   : > { %s341_s19 = scalar_lea.sflag [#allocation3], %s340_s18 }
 0x16e   : > { %p457_p3 = pnand %p460_p2, %p666_p8 }
 0x170   : > { %570 = dma.done.wait (!%p457_p3), %s341_s19, 128  }
 0x171   : > { %572 = vsyncadd (!%p457_p3), %s341_s19, 4294967168  ;;  %s16_s17 = sadd.s32 1, %s595_s17   ;;  %s747_s12 = smov %s579_s13 }
 0x172   : > { %p13_p5 = scmp.ge.s32.totalorder %s16_s17, 4   ;;  %s748_s13 = smov %s583_s14 }
 0x173   : > { %s749_s14 = smov %s672_s25  ;;  %s750_s15 = smov %s591_s16 }
 0x174   : > { %s751_s16 = smov %s753_s20  ;;  %15 = sbr.rel (!%p13_p5) target bundleno = 4 (0x4), region = 73 }
 0x17b   :  { %346 = vsyncpa [#allocation3], 1 }
 0x17c   :  { %348 = vsyncpa [#allocation3 + $0x1], 1 }

</bundles_post_ra>
